<compile_context>
chip_gen: v6e
topology: v6e:2x2x1
jax: 0.10.0
libtpu: 0.0.40
codegen_flags: <defaults>
</compile_context>

<pallas_src>
import jax
import jax.numpy as jnp
from jax.experimental import pallas as pl
from jax.experimental.pallas import tpu as pltpu


def _cdiv(a, b):
    return (a + b - 1) // b


def _round_up(x, m):
    return _cdiv(x, m) * m


def gcn_kernel(a_ref, h_ref, w_ref, b_ref, o_ref, acc_ref, deg_ref):
    """One (row-tile i, src-tile k) step of mean-aggregation + Linear."""
    k = pl.program_id(1)

    a = a_ref[...]                                                       # (TM, TK) bf16 0/1
    # Neighbor-feature partial sum on the MXU: bf16 x bf16 -> f32 accumulate.
    prod = jnp.dot(a, h_ref[...], preferred_element_type=jnp.float32)   # (TM, Dpad)
    # Partial in-degree: row-sum of the adjacency tile (hidden under the MXU slot).
    deg = jnp.sum(a.astype(jnp.float32), axis=-1, keepdims=True)        # (TM, 1)

    @pl.when(k == 0)
    def _first():
        acc_ref[...] = prod          # direct write: saves one zero-init store+load pass
        deg_ref[...] = deg

    @pl.when(k > 0)
    def _accumulate():
        acc_ref[...] += prod
        deg_ref[...] += deg

    @pl.when(k == pl.num_programs(1) - 1)
    def _finalize():
        d = deg_ref[...]                                                 # (TM, 1)
        inv = pl.reciprocal(jnp.maximum(d, 1.0), approx=False)
        mean = jnp.where(d > 0.0, acc_ref[...] * inv, 0.0)               # (TM, Dpad) f32
        # Linear in f32 (once per row tile -> negligible vs the A@H reduction loop).
        out = jnp.dot(mean, w_ref[...], preferred_element_type=jnp.float32)
        o_ref[...] = (out + b_ref[...]).astype(o_ref.dtype)


def gcn_layer(adj, feat, weight, bias, *, tm=512, tk=1024):
    """adj: (N, N) binary, feat: (N, Din), weight: (Dout, Din), bias: (Dout,)."""
    N = adj.shape[0]
    din = feat.shape[1]
    dout = weight.shape[0]

    # ---- tile selection: even split of N (minimal zero padding), aligned to
    # (16 sublanes for bf16 rows, 128 lanes for columns). >=2 row tiles when N is
    # large enough so the "parallel" axis can shard across v7x's two TensorCores.
    n_row_tiles = max(_cdiv(N, tm), 2 if N > 256 else 1)
    TM = _round_up(_cdiv(N, n_row_tiles), 16)
    n_rows = TM * n_row_tiles
    n_col_tiles = max(_cdiv(N, tk), 1)
    TK = _round_up(_cdiv(N, n_col_tiles), 128)
    n_cols = TK * n_col_tiles

    din_pad = _round_up(din, 128)
    dout_pad = _round_up(dout, 128)

    # ---- layout plumbing (one-time XLA work outside the kernel) ----
    # NOTE: bf16 adjacency is exact only for 0/1 edge weights.
    adj_p = jnp.pad(adj.astype(jnp.bfloat16), ((0, n_rows - N), (0, n_cols - N)))
    h_p = jnp.pad(feat.astype(jnp.bfloat16), ((0, n_cols - N), (0, din_pad - din)))
    w_t = jnp.pad(weight.T.astype(jnp.float32),
                  ((0, din_pad - din), (0, dout_pad - dout)))
    b_p = jnp.pad(bias.astype(jnp.float32).reshape(1, dout),
                  ((0, 0), (0, dout_pad - dout)))

    grid = (n_row_tiles, n_col_tiles)

    # ---- VMEM budget (double buffers for pipelined inputs/outputs + scratch) ----
    vmem_bytes = (2 * TM * TK * 2                 # A (bf16), double-buffered
                  + 2 * TK * din_pad * 2          # H (bf16), double-buffered
                  + 2 * din_pad * dout_pad * 4    # W.T (f32, constant index -> DMA'd once)
                  + 2 * 8 * dout_pad * 4          # bias
                  + 2 * TM * dout_pad * 4         # output, double-buffered
                  + TM * din_pad * 4              # f32 accumulator scratch
                  + TM * 128 * 4)                 # degree scratch (lane-padded)
    vmem_limit = int(min(64 * 1024 * 1024, max(32 * 1024 * 1024, 2 * vmem_bytes)))

    flops = 2 * n_rows * n_cols * din_pad + 2 * n_rows * din_pad * dout_pad
    bytes_accessed = (adj_p.size * 2                        # A streamed once (bf16)
                      + n_row_tiles * n_cols * din_pad * 2  # H re-streamed per row tile
                      + w_t.size * 4 + b_p.size * 4
                      + n_rows * dout_pad * 4)              # output writeback

    out_p = pl.pallas_call(
        gcn_kernel,
        out_shape=jax.ShapeDtypeStruct((n_rows, dout_pad), feat.dtype),
        grid_spec=pltpu.PrefetchScalarGridSpec(
            num_scalar_prefetch=0,
            grid=grid,
            in_specs=[
                pl.BlockSpec((TM, TK), lambda i, k: (i, k)),             # A (bf16)
                pl.BlockSpec((TK, din_pad), lambda i, k: (k, 0)),        # H (bf16)
                pl.BlockSpec((din_pad, dout_pad), lambda i, k: (0, 0)),  # W.T (f32)
                pl.BlockSpec((1, dout_pad), lambda i, k: (0, 0)),        # bias
            ],
            out_specs=pl.BlockSpec((TM, dout_pad), lambda i, k: (i, 0)),
            scratch_shapes=[
                pltpu.VMEM((TM, din_pad), jnp.float32),   # feature-sum accumulator
                pltpu.VMEM((TM, 1), jnp.float32),         # in-degree accumulator
            ],
        ),
        compiler_params=pltpu.CompilerParams(
            dimension_semantics=("parallel", "arbitrary"),
            vmem_limit_bytes=vmem_limit),
        cost_estimate=pl.CostEstimate(
            flops=flops, transcendentals=0, bytes_accessed=bytes_accessed),
    )(adj_p, h_p, w_t, b_p)

    return out_p[:N, :dout]


def gcn_layer_ref(adj, feat, weight, bias):
    """Pure-JAX f32 reference for correctness check."""
    agg = adj @ feat
    deg = adj.sum(axis=1, keepdims=True)
    mean = jnp.where(deg > 0.0, agg / jnp.where(deg > 0.0, deg, 1.0), 0.0)
    return mean @ weight.T + bias[None, :]


if __name__ == "__main__":
    key = jax.random.PRNGKey(0)
    k_adj, k_feat, k_w, k_b = jax.random.split(key, 4)

    N = 8          # number of graph nodes
    dim_in = 32
    dim_out = 32

    # Deterministic random binary graph (self-loops so no node is isolated).
    adj = (jax.random.uniform(k_adj, (N, N)) < 0.3).astype(jnp.float32)
    adj = jnp.maximum(adj, jnp.eye(N, dtype=jnp.float32))

    feat = jax.random.normal(k_feat, (N, dim_in), dtype=jnp.float32)

    # nn.Linear-style init: U(-1/sqrt(dim_in), 1/sqrt(dim_in))
    bound = 1.0 / (dim_in ** 0.5)
    weight = jax.random.uniform(k_w, (dim_out, dim_in), jnp.float32, -bound, bound)
    bias = jax.random.uniform(k_b, (dim_out,), jnp.float32, -bound, bound)

    out = gcn_layer(adj, feat, weight, bias)
    out = jax.block_until_ready(out)

    ref = gcn_layer_ref(adj, feat, weight, bias)
    assert out.shape == (N, dim_out)
    # H is rounded to bf16 inside the kernel (mixed-precision contract) -> ~1e-3 rel err.
    assert jnp.allclose(out, ref, atol=2e-2, rtol=2e-2), \
        float(jnp.max(jnp.abs(out - ref)))

    print("KERNEL_OK")
</pallas_src>

<mosaic_0001>
module attributes {stable_mosaic.version = 11 : i64} {
  func.func @gcn_kernel(%arg0: i32, %arg1: i32, %arg2: memref<16x128xbf16, #tpu.memory_space<vmem>>, %arg3: memref<128x128xbf16, #tpu.memory_space<vmem>>, %arg4: memref<128x128xf32, #tpu.memory_space<vmem>>, %arg5: memref<1x128xf32, #tpu.memory_space<vmem>>, %arg6: memref<16x128xf32, #tpu.memory_space<vmem>>, %arg7: memref<16x128xf32, #tpu.memory_space<vmem>>, %arg8: memref<16x1xf32, #tpu.memory_space<vmem>>) attributes {dimension_semantics = [#tpu.dimension_semantics<parallel>, #tpu.dimension_semantics<arbitrary>], iteration_bounds = array<i64: 1, 1>, scalar_prefetch = 0 : i64, scratch_operands = 2 : i64, tpu.core_type = #tpu.core_type<tc>, window_params = [{transform_indices = @transform_0, window_bounds = array<i64: 16, 128>}, {transform_indices = @transform_1, window_bounds = array<i64: 128, 128>}, {pipeline_mode = #tpu.pipeline_mode<synchronous>, transform_indices = @transform_2, window_bounds = array<i64: 128, 128>}, {pipeline_mode = #tpu.pipeline_mode<synchronous>, transform_indices = @transform_3, window_bounds = array<i64: 1, 128>}, {transform_indices = @transform_4, window_bounds = array<i64: 16, 128>}]} {
    %c0 = arith.constant 0 : index
    %c0_0 = arith.constant 0 : index
    %0 = vector.load %arg2[%c0, %c0_0] : memref<16x128xbf16, #tpu.memory_space<vmem>>, vector<16x128xbf16>
    %c0_1 = arith.constant 0 : index
    %c0_2 = arith.constant 0 : index
    %1 = vector.load %arg3[%c0_1, %c0_2] : memref<128x128xbf16, #tpu.memory_space<vmem>>, vector<128x128xbf16>
    %cst = arith.constant dense<0.000000e+00> : vector<16x128xf32>
    %2 = tpu.matmul %0, %1, %cst {dimension_numbers = #tpu.dot_dimension_numbers<[1], [0], [0], [1], [0, 0, 1, 1], [], []>} : vector<16x128xbf16>, vector<128x128xbf16>, vector<16x128xf32> -> vector<16x128xf32>
    %3 = arith.extf %0 : vector<16x128xbf16> to vector<16x128xf32>
    %cst_3 = arith.constant dense<0.000000e+00> : vector<16xf32>
    %4 = vector.multi_reduction <add>, %3, %cst_3 [1] : vector<16x128xf32> to vector<16xf32>
    %5 = vector.shape_cast %4 : vector<16xf32> to vector<16x1xf32>
    %c0_i32 = arith.constant 0 : i32
    %6 = arith.cmpi eq, %arg1, %c0_i32 : i32
    %7 = arith.extui %6 : i1 to i32
    %c0_i32_4 = arith.constant 0 : i32
    %8 = arith.cmpi ne, %7, %c0_i32_4 : i32
    scf.if %8 {
      %c0_9 = arith.constant 0 : index
      %c0_10 = arith.constant 0 : index
      %15 = vector.load %arg7[%c0_9, %c0_10] : memref<16x128xf32, #tpu.memory_space<vmem>>, vector<16x128xf32>
      tpu.vector_store %arg7[%c0_9, %c0_10], %2 {strides = array<i32>} : memref<16x128xf32, #tpu.memory_space<vmem>>, vector<16x128xf32>,
      %c0_11 = arith.constant 0 : index
      %c0_12 = arith.constant 0 : index
      %16 = vector.load %arg8[%c0_11, %c0_12] : memref<16x1xf32, #tpu.memory_space<vmem>>, vector<16x1xf32>
      tpu.vector_store %arg8[%c0_11, %c0_12], %5 {strides = array<i32>} : memref<16x1xf32, #tpu.memory_space<vmem>>, vector<16x1xf32>,
    } else {
    }
    %c0_i32_5 = arith.constant 0 : i32
    %9 = arith.cmpi sgt, %arg1, %c0_i32_5 : i32
    %10 = arith.extui %9 : i1 to i32
    %c0_i32_6 = arith.constant 0 : i32
    %11 = arith.cmpi ne, %10, %c0_i32_6 : i32
    scf.if %11 {
      %c0_9 = arith.constant 0 : index
      %c0_10 = arith.constant 0 : index
      %15 = vector.load %arg7[%c0_9, %c0_10] : memref<16x128xf32, #tpu.memory_space<vmem>>, vector<16x128xf32>
      %16 = arith.addf %15, %2 : vector<16x128xf32>
      %c0_11 = arith.constant 0 : index
      %c0_12 = arith.constant 0 : index
      %17 = vector.load %arg7[%c0_11, %c0_12] : memref<16x128xf32, #tpu.memory_space<vmem>>, vector<16x128xf32>
      tpu.vector_store %arg7[%c0_11, %c0_12], %16 {strides = array<i32>} : memref<16x128xf32, #tpu.memory_space<vmem>>, vector<16x128xf32>,
      %c0_13 = arith.constant 0 : index
      %c0_14 = arith.constant 0 : index
      %18 = vector.load %arg8[%c0_13, %c0_14] : memref<16x1xf32, #tpu.memory_space<vmem>>, vector<16x1xf32>
      %19 = arith.addf %18, %5 : vector<16x1xf32>
      %c0_15 = arith.constant 0 : index
      %c0_16 = arith.constant 0 : index
      %20 = vector.load %arg8[%c0_15, %c0_16] : memref<16x1xf32, #tpu.memory_space<vmem>>, vector<16x1xf32>
      tpu.vector_store %arg8[%c0_15, %c0_16], %19 {strides = array<i32>} : memref<16x1xf32, #tpu.memory_space<vmem>>, vector<16x1xf32>,
    } else {
    }
    %c0_i32_7 = arith.constant 0 : i32
    %12 = arith.cmpi eq, %arg1, %c0_i32_7 : i32
    %13 = arith.extui %12 : i1 to i32
    %c0_i32_8 = arith.constant 0 : i32
    %14 = arith.cmpi ne, %13, %c0_i32_8 : i32
    scf.if %14 {
      %c0_9 = arith.constant 0 : index
      %c0_10 = arith.constant 0 : index
      %15 = vector.load %arg8[%c0_9, %c0_10] : memref<16x1xf32, #tpu.memory_space<vmem>>, vector<16x1xf32>
      %cst_11 = arith.constant 1.000000e+00 : f32
      %16 = vector.broadcast %cst_11 : f32 to vector<16x1xf32>
      %17 = arith.maximumf %15, %16 : vector<16x1xf32>
      %18 = tpu.reciprocal %17 : vector<16x1xf32> -> vector<16x1xf32>
      %cst_12 = arith.constant 0.000000e+00 : f32
      %19 = vector.broadcast %cst_12 : f32 to vector<16x1xf32>
      %20 = arith.cmpf ogt, %15, %19 : vector<16x1xf32>
      %c0_13 = arith.constant 0 : index
      %c0_14 = arith.constant 0 : index
      %21 = vector.load %arg7[%c0_13, %c0_14] : memref<16x128xf32, #tpu.memory_space<vmem>>, vector<16x128xf32>
      %22 = vector.broadcast %18 : vector<16x1xf32> to vector<16x128xf32>
      %23 = arith.mulf %21, %22 : vector<16x128xf32>
      %cst_15 = arith.constant 0.000000e+00 : f32
      %24 = vector.shape_cast %20 : vector<16x1xi1> to vector<16x1xi1>
      %25 = vector.broadcast %24 : vector<16x1xi1> to vector<16x128xi1>
      %26 = vector.broadcast %cst_15 : f32 to vector<16x128xf32>
      %27 = arith.select %25, %23, %26 : vector<16x128xi1>, vector<16x128xf32>
      %c0_16 = arith.constant 0 : index
      %c0_17 = arith.constant 0 : index
      %28 = vector.load %arg4[%c0_16, %c0_17] : memref<128x128xf32, #tpu.memory_space<vmem>>, vector<128x128xf32>
      %cst_18 = arith.constant dense<0.000000e+00> : vector<16x128xf32>
      %29 = tpu.matmul %27, %28, %cst_18 {dimension_numbers = #tpu.dot_dimension_numbers<[1], [0], [0], [1], [0, 0, 1, 1], [], []>} : vector<16x128xf32>, vector<128x128xf32>, vector<16x128xf32> -> vector<16x128xf32>
      %c0_19 = arith.constant 0 : index
      %c0_20 = arith.constant 0 : index
      %30 = vector.load %arg5[%c0_19, %c0_20] : memref<1x128xf32, #tpu.memory_space<vmem>>, vector<1x128xf32>
      %31 = vector.broadcast %30 : vector<1x128xf32> to vector<16x128xf32>
      %32 = arith.addf %29, %31 : vector<16x128xf32>
      %c0_21 = arith.constant 0 : index
      %c0_22 = arith.constant 0 : index
      %33 = vector.load %arg6[%c0_21, %c0_22] : memref<16x128xf32, #tpu.memory_space<vmem>>, vector<16x128xf32>
      tpu.vector_store %arg6[%c0_21, %c0_22], %32 {strides = array<i32>} : memref<16x128xf32, #tpu.memory_space<vmem>>, vector<16x128xf32>,
    } else {
    }
    return
  }
  func.func @transform_0(%arg0: i32, %arg1: i32) -> (i32, i32) {
    %c0_i32 = arith.constant 0 : i32
    return %arg0, %arg1 : i32, i32
  }
  func.func @transform_1(%arg0: i32, %arg1: i32) -> (i32, i32) {
    %c0_i32 = arith.constant 0 : i32
    %c0_i32_0 = arith.constant 0 : i32
    return %arg1, %c0_i32 : i32, i32
  }
  func.func @transform_2(%arg0: i32, %arg1: i32) -> (i32, i32) {
    %c0_i32 = arith.constant 0 : i32
    %c0_i32_0 = arith.constant 0 : i32
    %c0_i32_1 = arith.constant 0 : i32
    return %c0_i32, %c0_i32_0 : i32, i32
  }
  func.func @transform_3(%arg0: i32, %arg1: i32) -> (i32, i32) {
    %c0_i32 = arith.constant 0 : i32
    %c0_i32_0 = arith.constant 0 : i32
    %c0_i32_1 = arith.constant 0 : i32
    return %c0_i32, %c0_i32_0 : i32, i32
  }
  func.func @transform_4(%arg0: i32, %arg1: i32) -> (i32, i32) {
    %c0_i32 = arith.constant 0 : i32
    %c0_i32_0 = arith.constant 0 : i32
    return %arg0, %c0_i32 : i32, i32
  }
}

</mosaic_0001>

<bundles_post_ra>
// kernel: tpu_custom_call.1
= control target key start
LH: loop header
LB: loop body
LE: loop exit
PB: predicated region body
PF: predicated region fallthrough
CT: control target
= control target key end

     0   :  { %9 = vsyncpa [#allocation5], 0  ;;  %s628_s0 = inlined_call_operand.hbm [shape: bf16[16,128], index: 0, kind: input, shape index: {}]   ;;  %s629_s1 = inlined_call_operand.hbm [shape: bf16[128,128], index: 1, kind: input, shape index: {}]   ;;  %s630_s2 = inlined_call_operand.hbm [shape: f32[128,128], index: 2, kind: input, shape index: {}]   ;;  %s631_s3 = inlined_call_operand.vmem [shape: f32[1,128], index: 3, kind: input, shape index: {}]   ;;  %s632_s4 = inlined_call_operand.hbm [shape: f32[16,128], index: 4, kind: output, shape index: {}]  }
   0x1   :  { %10 = vsyncpa [#allocation8], 0 }
   0x2   :  { %11 = vsyncpa [#allocation6], 0  ;;  %s567_s15 = smov [#allocation7]   ;;  %s568_s17 = smov [#allocation4]  }
   0x3   :  { %s29_s16 = sshll.u32 %s567_s15, 4  ;;  %s17_s18 = sshll.u32 %s568_s17, 4  ;;  %s30_s16 = int_to_ptr.vmem [resolvable:$true] %s29_s16  ;;  %s18_s18 = int_to_ptr.vmem [resolvable:$true] %s17_s18 }
   0x4   :  { %s489_s19 = scalar_lea.vmem %s30_s16, 1024  ;;  %p494_p1 = scmp.lt.s32.totalorder %s30_s16, %s30_s16 }
   0x5   :  { %p490_p0 = scmp.ne.s32.totalorder %s30_s16, %s489_s19  ;;  %p495_p2 = scmp.lt.s32.totalorder %s489_s19, %s489_s19 }
   0x7   :  { %p496_p3 = por %p495_p2, %p494_p1 }
   0x9   :  { %p497_p4 = pnand %p496_p3, %p490_p0 }
   0xb   :  { %500 = shalt.err (!%p497_p4)
}
   0xc   :  { %s569_s20 = smov 64   ;;  %s570_s21 = smov 4  }
   0xd   :  { %35 = dma.hbm_to_vmem [thread:$0]  %s629_s1, 1024, %s30_s16, [#allocation8], %s569_s20, %s569_s20, %s570_s21  }
   0xe   :  { %s509_s24 = scalar_lea.vmem %s18_s18, 128  ;;  %p514_p6 = scmp.lt.s32.totalorder %s18_s18, %s18_s18 }
   0xf   :  { %p510_p5 = scmp.ne.s32.totalorder %s18_s18, %s509_s24  ;;  %p515_p7 = scmp.lt.s32.totalorder %s509_s24, %s509_s24 }
  0x11   :  { %p516_p8 = por %p515_p7, %p514_p6 }
  0x13   :  { %p517_p9 = pnand %p516_p8, %p510_p5 }
  0x15   :  { %520 = shalt.err (!%p517_p9)
}
  0x16   :  { %23 = dma.hbm_to_vmem [thread:$0]  %s628_s0, 128, %s18_s18, [#allocation5], %s569_s20, %s569_s20, %s570_s21  }
  0x17   :  { %s571_s27 = smov [#allocation9]  }
  0x18   :  { %s41_s28 = sshll.u32 %s571_s27, 4  ;;  %s42_s28 = int_to_ptr.vmem [resolvable:$true] %s41_s28 }
  0x19   :  { %s529_s29 = scalar_lea.vmem %s42_s28, 2048  ;;  %p534_p11 = scmp.lt.s32.totalorder %s42_s28, %s42_s28 }
  0x1a   :  { %p530_p10 = scmp.ne.s32.totalorder %s42_s28, %s529_s29  ;;  %p535_p12 = scmp.lt.s32.totalorder %s529_s29, %s529_s29 }
  0x1c   :  { %p536_p13 = por %p535_p12, %p534_p11 }
  0x1e   :  { %p537_p0 = pnand %p536_p13, %p530_p10 }
  0x20   :  { %540 = shalt.err (!%p537_p0)
}
  0x21   :  { %s572_s1 = smov 128   ;;  %s573_s30 = smov 8  }
  0x22   :  { %47 = dma.hbm_to_vmem [thread:$0]  %s630_s2, 2048, %s42_s28, [#allocation8], %s572_s1, %s572_s1, %s573_s30  }
  0x23   :  { %561 = dma.done.wait [#allocation5], 128  }
  0x24   :  { %562 = vsyncadd [#allocation5], 4294967168 }
  0x25   :  { %563 = dma.done.wait [#allocation8], 3072  }
  0x26   :  { %564 = vsyncadd [#allocation8], 4294964224  ;;  %v574_v0 = vmov 0.0   ;;  %vm575_vm0 = vmmov 0   ;;  %v60_v1 = vld [vmem:[#allocation4] sm:$0xff]   ;;  %v469_v5 = vld [vmem:[#allocation7 + $0x30] sm:$0xff]  }
  0x27   :  { %399 = vmatprep.subr.bf16.mxu0 %v574_v0  ;;  %415 = vmatprep.mubr.msk.bf16.mxu0 %vm575_vm0, %v574_v0  ;;  %v173_v2 = vunpack.c.l.bf16 %v60_v1  ;;  %v468_v3 = vld [vmem:[#allocation7 + $0x38] sm:$0xff]   ;;  %v174_v4 = vunpack.c.h.bf16 %v60_v1  ;;  %v470_v6 = vld [vmem:[#allocation7 + $0x28] sm:$0xff]   ;;  %v471_v7 = vld [vmem:[#allocation7 + $0x20] sm:$0xff]   ;;  %v576_v9 = vmov 0   ;;  %vm185_vm1 = vcmask 7168   ;;  %s577_s7 = smov [#allocation10]  }
  0x28   :  { %400 = vmatpush3.bf16.msra.mxu0 %v468_v3  ;;  %v472_v8 = vld [vmem:[#allocation7 + $0x18] sm:$0xff]   ;;  %466 = vset.pattern.permute.xlu0 %v576_v9  ;;  %v473_v10 = vld [vmem:[#allocation7 + $0x10] sm:$0xff]   ;;  %v474_v11 = vld [vmem:[#allocation7 + $0x8] sm:$0xff]   ;;  %s347_s8 = sshll.u32 %s577_s7, 4  ;;  %s348_s8 = int_to_ptr.vmem [resolvable:$true] %s347_s8 }
  0x29   :  { %175 = vadd.xlane.f32.xlu0 %v173_v2  ;;  %401 = vmatprep.subr.bf16.mxu0 %v574_v0  ;;  %v475_v12 = vld [vmem:[#allocation7] sm:$0xff]   ;;  %v257_v13 = vld [vmem:[#allocation9 + $0x78] sm:$0xff]  ;;  %v256_v14 = vld [vmem:[#allocation9 + $0x70] sm:$0xff]  ;;  %s541_s9 = scalar_lea.vmem %s348_s8, 256  ;;  %p546_p2 = scmp.lt.s32.totalorder %s348_s8, %s348_s8 }
  0x2a   :  { %465 = vset.pattern.permute.xlu1 %v576_v9  ;;  %419 = vmatprep.subr.mxu1 %v257_v13  ;;  %v255_v15 = vld [vmem:[#allocation9 + $0x68] sm:$0xff]  ;;  %v254_v16 = vld [vmem:[#allocation9 + $0x60] sm:$0xff]  ;;  %v253_v17 = vld [vmem:[#allocation9 + $0x58] sm:$0xff]  ;;  %p542_p1 = scmp.ne.s32.totalorder %s348_s8, %s541_s9  ;;  %p547_p3 = scmp.lt.s32.totalorder %s541_s9, %s541_s9 }
  0x2b   :  { %420 = vmatpush3.msra.mxu1 %v257_v13  ;;  %v252_v20 = vld [vmem:[#allocation9 + $0x50] sm:$0xff]  ;;  %v251_v21 = vld [vmem:[#allocation9 + $0x48] sm:$0xff]  ;;  %v250_v24 = vld [vmem:[#allocation9 + $0x40] sm:$0xff] }
  0x2c   :  { %402 = vmatpush3.bf16.msra.mxu0 %v469_v5  ;;  %421 = vmatprep.subr.mxu1 %v256_v14  ;;  %v249_v26 = vld [vmem:[#allocation9 + $0x38] sm:$0xff]  ;;  %v248_v29 = vld [vmem:[#allocation9 + $0x30] sm:$0xff]  ;;  %v247_v30 = vld [vmem:[#allocation9 + $0x28] sm:$0xff]  ;;  %p548_p4 = por %p547_p3, %p546_p2 }
  0x2d   :  { %177 = vadd.xlane.f32.xlu0 %v174_v4  ;;  %403 = vmatprep.subr.bf16.mxu0 %v574_v0  ;;  %v246_v31 = vld [vmem:[#allocation9 + $0x20] sm:$0xff]  ;;  %v245_v32 = vld [vmem:[#allocation9 + $0x18] sm:$0xff]  ;;  %v244_v33 = vld [vmem:[#allocation9 + $0x10] sm:$0xff] }
  0x2e   :  { %422 = vmatpush3.msra.mxu1 %v256_v14  ;;  %v243_v35 = vld [vmem:[#allocation9 + $0x8] sm:$0xff]  ;;  %v242_v36 = vld [vmem:[#allocation9] sm:$0xff]  ;;  %p549_p5 = pnand %p548_p4, %p542_p1 }
  0x2f   :  { %423 = vmatprep.subr.mxu1 %v255_v15  ;;  %v369_v49 = vld [vmem:[%s631_s3] ss:$0 sm:$0xff] }
  0x30   :  { %404 = vmatpush3.bf16.msra.mxu0 %v470_v6  ;;  %424 = vmatpush3.msra.mxu1 %v255_v15 }
  0x31   :  { %405 = vmatprep.subr.bf16.mxu0 %v574_v0  ;;  %425 = vmatprep.subr.mxu1 %v254_v16 }
  0x32   :  { %426 = vmatpush3.msra.mxu1 %v254_v16 }
  0x33   :  { %427 = vmatprep.subr.mxu1 %v253_v17 }
  0x34   :  { %406 = vmatpush3.bf16.msra.mxu0 %v471_v7  ;;  %428 = vmatpush3.msra.mxu1 %v253_v17 }
  0x35   :  { %407 = vmatprep.subr.bf16.mxu0 %v574_v0  ;;  %429 = vmatprep.subr.mxu1 %v252_v20 }
  0x36   :  { %430 = vmatpush3.msra.mxu1 %v252_v20 }
  0x37   :  { %431 = vmatprep.subr.mxu1 %v251_v21 }
  0x38   :  { %408 = vmatpush3.bf16.msra.mxu0 %v472_v8  ;;  %432 = vmatpush3.msra.mxu1 %v251_v21 }
  0x39   :  { %409 = vmatprep.subr.bf16.mxu0 %v574_v0  ;;  %433 = vmatprep.subr.mxu1 %v250_v24 }
  0x3a   :  { %434 = vmatpush3.msra.mxu1 %v250_v24 }
  0x3b   :  { %435 = vmatprep.subr.mxu1 %v249_v26 }
  0x3c   :  { %410 = vmatpush3.bf16.msra.mxu0 %v473_v10  ;;  %436 = vmatpush3.msra.mxu1 %v249_v26 }
  0x3d   :  { %411 = vmatprep.subr.bf16.mxu0 %v574_v0  ;;  %437 = vmatprep.subr.mxu1 %v248_v29 }
  0x3e   :  { %438 = vmatpush3.msra.mxu1 %v248_v29 }
  0x3f   :  { %439 = vmatprep.subr.mxu1 %v247_v30 }
  0x40   :  { %412 = vmatpush3.bf16.msra.mxu0 %v474_v11  ;;  %440 = vmatpush3.msra.mxu1 %v247_v30 }
  0x41   :  { %413 = vmatprep.subr.bf16.mxu0 %v574_v0  ;;  %441 = vmatprep.subr.mxu1 %v246_v31 }
  0x42   :  { %442 = vmatpush3.msra.mxu1 %v246_v31 }
  0x43   :  { %443 = vmatprep.subr.mxu1 %v245_v32 }
  0x44   :  { %414 = vmatpush3.bf16.msra.mxu0 %v475_v12  ;;  %444 = vmatpush3.msra.mxu1 %v245_v32 }
  0x45   :  { %445 = vmatprep.subr.mxu1 %v244_v33 }
  0x46   :  { %446 = vmatpush3.msra.mxu1 %v244_v33 }
  0x47   :  { %416 = vmatmul.mubr.bf16.vlgmr.msra.gmra.mxu0 %v60_v1  ;;  %447 = vmatprep.subr.mxu1 %v243_v35 }
  0x48   :  { %448 = vmatpush3.msra.mxu1 %v243_v35 }
  0x49   :  { %449 = vmatprep.subr.mxu1 %v242_v36 }
  0x4a   :  { %450 = vmatpush3.msra.mxu1 %v242_v36 }
  0xb2   :  { %v176_v18 = vpop.xlane.xlu0 %175 }
  0xb3   :  { %186 = vst.msk [vmem:[#allocation3] sm:$0xff] %vm185_vm1, %v176_v18 }
  0xb6   :  { %v178_v19 = vpop.xlane.xlu0 %177 }
  0xb7   :  { %187 = vst.msk [vmem:[#allocation3 + $0x8] sm:$0xff] %vm185_vm1, %v178_v19 }
  0xba   :  { %v208_v22 = vld [vmem:[#allocation3] sm:$0xff] }
  0xbb   :  { %vm214_vm2 = vcmp.gt.f32.partialorder %v208_v22, 0.0  ;;  %v210_v23 = vmax.f32 %v208_v22, 1.0 }
  0xbc   :  { %v230_v25 = vsel %vm214_vm2, 1, %v576_v9 }
  0xbd   :  { %233 = vperm.xlu0 %466, %v230_v25   ;;  %477 = vrcp.f32 %v210_v23 }
  0xbe   :  { %v209_v27 = vld [vmem:[#allocation3 + $0x8] sm:$0xff] }
  0xbf   :  { %v211_v28 = vmax.f32 %v209_v27, 1.0  ;;  %vm215_vm3 = vcmp.gt.f32.partialorder %v209_v27, 0.0 }
  0xc0   :  { %v231_v38 = vsel %vm215_vm3, 1, %v576_v9 }
  0xc1   :  { %479 = vrcp.f32 %v211_v28 }
  0xca   :  { %v478_v34 = vpop.eup %477 }
  0xcb   :  { %220 = vperm.xlu1 %465, %v478_v34  }
  0xce   :  { %v480_v37 = vpop.eup %479 }
  0xcf   :  { %225 = vperm.xlu1 %465, %v480_v37  }
  0xd3   :  { %236 = vperm.xlu1 %465, %v231_v38  }
 0x107   :  { %v166_v39 = vpop.f32.mrf.mxu0 }
 0x109   :  { %v417_v40 = vpop.f32.mrf.mxu0 }
 0x10b   :  { %v169_v41 = vpop.f32.mrf.mxu0 }
 0x10d   :  { %v418_v42 = vpop.f32.mrf.mxu0 }
 0x138   :  { %v234_v43 = vpop.permute.xlu0 %233 }
 0x139   :  { %vm238_vm4 = vcmp.eq.s32.totalorder %v234_v43, 1 }
 0x146   :  { %v221_v44 = vpop.permute.xlu1 %220 }
 0x147   :  { %v228_v45 = vmul.f32 %v221_v44, %v166_v39 }
 0x149   :  { %451 = vmatprep.mubr.msk.f32.mxu1 %vm238_vm4, %v228_v45 }
 0x14a   :  { %v226_v46 = vpop.permute.xlu1 %225 }
 0x14b   :  { %v229_v47 = vmul.f32 %v226_v46, %v169_v41 }
 0x14e   :  { %v237_v48 = vpop.permute.xlu1 %236 }
 0x14f   :  { %vm239_vm5 = vcmp.eq.s32.totalorder %v237_v48, 1 }
 0x150   :  { %452 = vmatmul.mubr.msk.f32.vlgmr.msra.gmra.mxu1 %vm239_vm5, %v229_v47 }
 0x210   :  { %v453_v50 = vpop.f32.mrf.mxu1 }
 0x211   :  { %v337_v51 = vadd.f32 %v453_v50, %v369_v49 }
 0x212   :  { %v331_v52 = vpop.f32.mrf.mxu1 }
 0x213   :  { %341 = vst [vmem:[#allocation10 + $0x8] sm:$0xff] %v337_v51  ;;  %v332_v53 = vadd.f32 %v369_v49, %v331_v52 }
 0x215   :  { %340 = vst [vmem:[#allocation10] sm:$0xff] %v332_v53 }
 0x216   :  { %552 = shalt.err (!%p549_p5)
}
 0x217   :  { %353 = dma.vmem_to_hbm [thread:$0]  %s348_s8, 256, %s632_s4, [#allocation6], %s572_s1, %s572_s1, %s573_s30  }
 0x218   :  { %565 = dma.done.wait [#allocation6], 256  }
 0x219   :  { %566 = vsyncadd [#allocation6], 4294967040 }
 0x21a   :  { %357 = vsyncpa [#allocation5], 1 }
 0x21b   :  { %358 = vsyncpa [#allocation8], 1 }
 0x21c   :  { %359 = vsyncpa [#allocation6], 1 }

</bundles_post_ra>
